<compile_context>
chip_gen: v7x
topology: tpu7x:2x2x1
jax: 0.10.0
libtpu: 0.0.40
codegen_flags: <defaults>
</compile_context>

<pallas_src>
import math
from functools import partial

import numpy as np
import jax
import jax.numpy as jnp
from jax.experimental import pallas as pl
from jax.experimental.pallas import tpu as pltpu


_VMEM_LIMIT = 32 * 1024 * 1024  # >= v5e scoped default, == v6e/v7x default; safe on v7x's 64 MiB


def _round_up(x, m):
    return ((x + m - 1) // m) * m


def _bf16_eup_ok():
    # bf16 transcendentals (EUP) exist on v6e/v7x only; keep f32 tanh on older chips.
    try:
        kind = jax.devices()[0].device_kind.lower()
        return not any(v in kind for v in ("v2", "v3", "v4", "v5"))
    except Exception:
        return False


_GELU_BF16_TANH = _bf16_eup_ok()


# --------------------------- weight preparation ------------------------------

def _n_tiling(N):
    Np = _round_up(N, 128)
    if Np <= 512:
        return Np, Np
    if Np % 512 == 0:
        return 512, Np
    if Np % 256 == 0:
        return 256, Np
    return 256, _round_up(N, 256)


def _k_tiling(K):
    if K <= 2048:
        return K, K
    # TODO(synk): pipeline_mode=pl.Buffered(3) on the weight spec could further hide
    # K-loop DMA on v5e; tk=1024 already amortizes per-step overhead.
    return 1024, _round_up(K, 1024)


def make_linear(w, b=None):
    """Pad/cast a (K, N) weight and its bias ONCE at init (no per-call HBM round trip)."""
    K, N = w.shape
    tk, Kp = _k_tiling(K)
    tn, Np = _n_tiling(N)
    wp = w.astype(jnp.bfloat16)
    if (Kp, Np) != (K, N):
        wp = jnp.pad(wp, ((0, Kp - K), (0, Np - N)))
    if b is None:
        bp = jnp.zeros((1, Np), jnp.float32)
    else:
        bp = b.astype(jnp.float32).reshape(1, N)
        if Np != N:
            bp = jnp.pad(bp, ((0, 0), (0, Np - N)))
    return {"w": wp, "b": bp, "K": K, "N": N, "tk": tk, "tn": tn}


# --------------------------- fused linear (GEMM) ----------------------------
# y = [residual +] act( LN?(x) @ W + b );  bf16 MXU inputs, f32 accumulation.

def _fused_linear_kernel(*refs, nk, has_ln, has_res, activation, eps, bf16_tanh):
    it = iter(refs)
    x_ref = next(it)
    w_ref = next(it)
    b_ref = next(it)
    g_ref = next(it) if has_ln else None
    bt_ref = next(it) if has_ln else None
    r_ref = next(it) if has_res else None
    o_ref = next(it)
    acc_ref = next(it) if nk > 1 else None
    xln_ref = next(it) if has_ln else None

    if has_ln:
        # LayerNorm'd row tile cached in VMEM at j==0, reused across all column tiles.
        @pl.when(pl.program_id(1) == 0)
        def _():
            xb = x_ref[...].astype(jnp.float32)
            mu = jnp.mean(xb, axis=-1, keepdims=True)
            xc = xb - mu
            var = jnp.mean(xc * xc, axis=-1, keepdims=True)
            y = xc * jax.lax.rsqrt(var + eps) * g_ref[...] + bt_ref[...]
            xln_ref[...] = y.astype(jnp.bfloat16)

        xin = xln_ref[...]
    else:
        xin = x_ref[...].astype(jnp.bfloat16)

    part = jnp.dot(xin, w_ref[...], preferred_element_type=jnp.float32)

    def _finalize(acc):
        y = acc + b_ref[...]
        if activation == "gelu":
            # TODO(synk): PyTorch nn.GELU default is exact erf; tanh approximation
            # used here for Mosaic-safe lowering (difference ~1e-3).
            c = math.sqrt(2.0 / math.pi)
            t_in = c * (y + 0.044715 * y * y * y)
            if bf16_tanh:
                t = jnp.tanh(t_in.astype(jnp.bfloat16)).astype(jnp.float32)
            else:
                t = jnp.tanh(t_in)
            y = 0.5 * y * (1.0 + t)
        if has_res:
            y = y + r_ref[...].astype(jnp.float32)
        o_ref[...] = y.astype(o_ref.dtype)

    if nk == 1:
        _finalize(part)
    else:
        k = pl.program_id(2)

        @pl.when(k == 0)
        def _():
            acc_ref[...] = jnp.zeros_like(acc_ref)

        acc_ref[...] += part

        @pl.when(k == nk - 1)
        def _():
            _finalize(acc_ref[...])


def pallas_linear(x, lin, *, ln=None, residual=None, activation=None,
                  out_dtype=jnp.float32):
    """x: (M, K); lin: prepadded weight dict from make_linear.
    Optional fused LayerNorm on x (gamma, beta as (1, K) f32), residual add, activation."""
    M, K = x.shape
    assert K == lin["K"]
    Kp, Np = lin["w"].shape
    tk, tn, N = lin["tk"], lin["tn"], lin["N"]
    nk = Kp // tk

    if ln is not None and nk > 1:
        # LN fusion needs the full K per tile; standalone LN fallback (not hit at ViT scales).
        x = pallas_layernorm(x, ln[0], ln[1])
        ln = None
    has_ln = ln is not None
    has_res = residual is not None

    tm = 512 if M > 512 else _round_up(M, 16)
    Mp = _round_up(M, tm)

    xp = x
    if Mp != M or Kp != K:
        xp = jnp.pad(x, ((0, Mp - M), (0, Kp - K)))

    in_specs = [
        pl.BlockSpec((tm, tk), lambda i, j, k: (i, k)),
        pl.BlockSpec((tk, tn), lambda i, j, k: (k, j)),
        pl.BlockSpec((1, tn), lambda i, j, k: (0, j)),
    ]
    args = [xp, lin["w"], lin["b"]]
    if has_ln:
        in_specs += [pl.BlockSpec((1, tk), lambda i, j, k: (0, k)),
                     pl.BlockSpec((1, tk), lambda i, j, k: (0, k))]
        args += [ln[0], ln[1]]
    if has_res:
        rp = residual.astype(jnp.float32)
        if Mp != M or Np != N:
            rp = jnp.pad(rp, ((0, Mp - M), (0, Np - N)))
        in_specs.append(pl.BlockSpec((tm, tn), lambda i, j, k: (i, j)))
        args.append(rp)

    scratch_shapes = []
    if nk > 1:
        scratch_shapes.append(pltpu.VMEM((tm, tn), jnp.float32))
    if has_ln:
        scratch_shapes.append(pltpu.VMEM((tm, tk), jnp.bfloat16))

    out = pl.pallas_call(
        partial(_fused_linear_kernel, nk=nk, has_ln=has_ln, has_res=has_res,
                activation=activation, eps=1e-5, bf16_tanh=_GELU_BF16_TANH),
        out_shape=jax.ShapeDtypeStruct((Mp, Np), out_dtype),
        grid=(Mp // tm, Np // tn, nk),
        in_specs=in_specs,
        out_specs=pl.BlockSpec((tm, tn), lambda i, j, k: (i, j)),
        scratch_shapes=scratch_shapes,
        compiler_params=pltpu.CompilerParams(
            dimension_semantics=("parallel",
                                 "arbitrary" if has_ln else "parallel",
                                 "arbitrary"),
            vmem_limit_bytes=_VMEM_LIMIT),
    )(*args)
    if Mp != M or Np != N:
        out = out[:M, :N]
    return out


# ------------------------------ LayerNorm (standalone) ----------------------

def _layernorm_kernel(x_ref, g_ref, b_ref, o_ref, *, eps):
    x = x_ref[...].astype(jnp.float32)
    mu = jnp.mean(x, axis=-1, keepdims=True)
    xc = x - mu
    var = jnp.mean(xc * xc, axis=-1, keepdims=True)
    o_ref[...] = (xc * jax.lax.rsqrt(var + eps) * g_ref[...] + b_ref[...]).astype(o_ref.dtype)


def pallas_layernorm(x2d, gamma, beta, eps=1e-5):
    M, D = x2d.shape
    g = gamma.reshape(1, D).astype(jnp.float32)
    b = beta.reshape(1, D).astype(jnp.float32)
    tm = 512 if M > 512 else _round_up(M, 16)
    Mp = _round_up(M, tm)
    xp = x2d if Mp == M else jnp.pad(x2d, ((0, Mp - M), (0, 0)))
    out = pl.pallas_call(
        partial(_layernorm_kernel, eps=eps),
        out_shape=jax.ShapeDtypeStruct((Mp, D), jnp.float32),
        grid=(Mp // tm,),
        in_specs=[
            pl.BlockSpec((tm, D), lambda i: (i, 0)),
            pl.BlockSpec((1, D), lambda i: (0, 0)),
            pl.BlockSpec((1, D), lambda i: (0, 0)),
        ],
        out_specs=pl.BlockSpec((tm, D), lambda i: (i, 0)),
        compiler_params=pltpu.CompilerParams(
            dimension_semantics=("parallel",),
            vmem_limit_bytes=_VMEM_LIMIT),
    )(xp, g, b)
    return out[:M] if Mp != M else out


# ----------------- fused multi-head attention + out-proj + residual ---------

def _attn_proj_kernel(qkv_ref, wp_ref, bp_ref, res_ref, o_ref, attn_ref, *,
                      num_heads, dh):
    D = num_heads * dh
    qkv = qkv_ref[0]
    if qkv.dtype != jnp.bfloat16:
        qkv = qkv.astype(jnp.bfloat16)
    # Each head's output goes straight to a VMEM scratch -> no (S, D) f32 accumulator
    # stays live in vregs across the unrolled head loop.  Softmax scale is folded into
    # the q columns of W_qkv at init.
    # TODO(synk): head slices are dh-wide (64-lane offsets at full ViT scale); a
    # head-pair-aligned QKV layout would make these free views instead of masked accesses.
    for h in range(num_heads):
        q = qkv[:, h * dh:(h + 1) * dh]
        k = qkv[:, D + h * dh:D + (h + 1) * dh]
        v = qkv[:, 2 * D + h * dh:2 * D + (h + 1) * dh]
        s = jax.lax.dot_general(q, k, (((1,), (1,)), ((), ())),
                                preferred_element_type=jnp.float32)     # (S, S)
        s = s - jnp.max(s, axis=-1, keepdims=True)
        p = jnp.exp(s)
        p = p * pl.reciprocal(jnp.sum(p, axis=-1, keepdims=True), approx=True)
        o_h = jnp.dot(p.astype(jnp.bfloat16), v, preferred_element_type=jnp.float32)
        attn_ref[:, h * dh:(h + 1) * dh] = o_h.astype(jnp.bfloat16)
    # Single (S, D) @ (D, D) output projection: K=D contraction fills the MXU.
    out = jnp.dot(attn_ref[...], wp_ref[...], preferred_element_type=jnp.float32)
    o_ref[0] = (out + bp_ref[...] + res_ref[0]).astype(o_ref.dtype)


def pallas_attention_proj(qkv, w_proj, b_proj, x_res, num_heads):
    """qkv: (B, S, 3D) bf16 from the fused LN+QKV GEMM; returns x_res + proj(attn)."""
    B, S, D3 = qkv.shape
    D = D3 // 3
    assert D % num_heads == 0
    dh = D // num_heads
    # TODO(synk): on v7x a second parallel grid axis (e.g. query tiles) would feed both
    # TensorCores when B is small; S is tiny for this module so grid=(B,) is kept.
    return pl.pallas_call(
        partial(_attn_proj_kernel, num_heads=num_heads, dh=dh),
        out_shape=jax.ShapeDtypeStruct((B, S, D), jnp.float32),
        grid=(B,),
        in_specs=[
            pl.BlockSpec((1, S, D3), lambda b: (b, 0, 0)),
            pl.BlockSpec((D, D), lambda b: (0, 0)),
            pl.BlockSpec((1, D), lambda b: (0, 0)),
            pl.BlockSpec((1, S, D), lambda b: (b, 0, 0)),
        ],
        out_specs=pl.BlockSpec((1, S, D), lambda b: (b, 0, 0)),
        scratch_shapes=[pltpu.VMEM((S, D), jnp.bfloat16)],
        compiler_params=pltpu.CompilerParams(
            dimension_semantics=("parallel",),
            vmem_limit_bytes=_VMEM_LIMIT),
    )(qkv, w_proj, b_proj, x_res)


# ------------------------ pairwise-diff + tanh head --------------------------

def _pairwise_kernel(x_ref, o_ref, *, img_size):
    a = x_ref[0]                                 # (C, Nn) — Nn on lanes
    d = a[:, :, None] - a[:, None, :]            # d[c, i, j] = a[c, i] - a[c, j]
    o_ref[0] = jnp.tanh(d) * img_size


def pallas_pairwise_tanh(x_nopos, img_size):
    """x_nopos: (B, Nn, C) -> pred_T: (B, Nn*Nn, C) = tanh(x_i - x_j) * img_size."""
    # TODO(synk): a lane-dense (B, C, Nn*Nn) output would avoid masked partial stores,
    # but the in-kernel (Nn, Nn)->(Nn*Nn) relayout is not worth the risk at this size.
    B, Nn, C = x_nopos.shape
    xt = jnp.transpose(x_nopos, (0, 2, 1)).astype(jnp.float32)   # (B, C, Nn) channel-major
    out = pl.pallas_call(
        partial(_pairwise_kernel, img_size=float(img_size)),
        out_shape=jax.ShapeDtypeStruct((B, C, Nn, Nn), jnp.float32),
        grid=(B,),
        in_specs=[pl.BlockSpec((1, C, Nn), lambda b: (b, 0, 0))],
        out_specs=pl.BlockSpec((1, C, Nn, Nn), lambda b: (b, 0, 0, 0)),
        compiler_params=pltpu.CompilerParams(dimension_semantics=("parallel",)),
    )(xt)
    return jnp.transpose(out, (0, 2, 3, 1)).reshape(B, Nn * Nn, C)


# ------------------------------ MSE reduction --------------------------------

def _mse_kernel(p_ref, g_ref, o_ref, *, inv_scale):
    i = pl.program_id(0)

    @pl.when(i == 0)
    def _():
        o_ref[0, 0] = 0.0

    d = (p_ref[...] - g_ref[...]) * inv_scale
    o_ref[0, 0] += jnp.sum(d * d)


def pallas_mse(pred, gt, img_size):
    """mean((pred/img_size - gt/img_size)**2), lane-dense 128-wide rows."""
    count = int(np.prod(pred.shape))
    LANES = 128
    p = pred.reshape(-1).astype(jnp.float32)
    g = gt.reshape(-1).astype(jnp.float32)
    Lp = _round_up(count, 8 * LANES)
    if Lp != count:
        p = jnp.pad(p, (0, Lp - count))
        g = jnp.pad(g, (0, Lp - count))
    R = Lp // LANES
    tr = 512 if R > 512 else R
    Rp = _round_up(R, tr)
    p = p.reshape(R, LANES)
    g = g.reshape(R, LANES)
    if Rp != R:
        p = jnp.pad(p, ((0, Rp - R), (0, 0)))
        g = jnp.pad(g, ((0, Rp - R), (0, 0)))
    ssum = pl.pallas_call(
        partial(_mse_kernel, inv_scale=1.0 / float(img_size)),
        out_shape=jax.ShapeDtypeStruct((1, 1), jnp.float32),
        grid=(Rp // tr,),
        in_specs=[
            pl.BlockSpec((tr, LANES), lambda i: (i, 0)),
            pl.BlockSpec((tr, LANES), lambda i: (i, 0)),
        ],
        out_specs=pl.BlockSpec((1, 1), lambda i: (0, 0),
                               memory_space=pltpu.MemorySpace.SMEM),
        compiler_params=pltpu.CompilerParams(dimension_semantics=("arbitrary",)),
    )(p, g)
    return ssum[0, 0] / count


# ----------------------------- model pieces (glue) --------------------------

def get_2d_sincos_pos_embed(embed_dim, grid_size, cls_token=False):
    def get_1d(dim, pos):
        omega = np.arange(dim // 2, dtype=np.float32)
        omega /= dim / 2.0
        omega = 1.0 / (10000.0 ** omega)
        pos = pos.reshape(-1)
        out = np.einsum("m,d->md", pos, omega)
        return np.concatenate([np.sin(out), np.cos(out)], axis=1)

    grid_h = np.arange(grid_size, dtype=np.float32)
    grid_w = np.arange(grid_size, dtype=np.float32)
    grid = np.meshgrid(grid_w, grid_h)
    grid = np.stack(grid, axis=0).reshape([2, 1, grid_size, grid_size])
    emb_h = get_1d(embed_dim // 2, grid[0])
    emb_w = get_1d(embed_dim // 2, grid[1])
    pos_embed = np.concatenate([emb_h, emb_w], axis=1)
    if cls_token:
        pos_embed = np.concatenate([np.zeros([1, embed_dim], np.float32), pos_embed], axis=0)
    return pos_embed.astype(np.float32)


def _init_linear(key, fan_in, fan_out):
    limit = math.sqrt(6.0 / (fan_in + fan_out))  # xavier-uniform
    return jax.random.uniform(key, (fan_in, fan_out), jnp.float32, -limit, limit)


def init_block(key, dim, num_heads, mlp_ratio):
    hidden = int(dim * mlp_ratio)
    ks = jax.random.split(key, 4)
    scale = float(dim // num_heads) ** -0.5
    w_qkv = _init_linear(ks[0], dim, 3 * dim)
    # Fold the attention softmax scale into the q third of the QKV projection.
    w_qkv = w_qkv.at[:, :dim].multiply(scale)
    return {
        "ln1_g": jnp.ones((1, dim), jnp.float32), "ln1_b": jnp.zeros((1, dim), jnp.float32),
        "qkv": make_linear(w_qkv, jnp.zeros((3 * dim,), jnp.float32)),
        "w_proj": _init_linear(ks[1], dim, dim).astype(jnp.bfloat16),
        "b_proj": jnp.zeros((1, dim), jnp.float32),
        "ln2_g": jnp.ones((1, dim), jnp.float32), "ln2_b": jnp.zeros((1, dim), jnp.float32),
        "fc1": make_linear(_init_linear(ks[2], dim, hidden), jnp.zeros((hidden,), jnp.float32)),
        "fc2": make_linear(_init_linear(ks[3], hidden, dim), jnp.zeros((dim,), jnp.float32)),
    }


def init_params(key, cfg):
    D, p, C = cfg["embed_dim"], cfg["patch_size"], cfg["in_chans"]
    grid = cfg["img_size"] // p
    keys = jax.random.split(key, 8 + cfg["depth"] + cfg["decoder_depth"])
    params = {
        "patch": make_linear(_init_linear(keys[0], C * p * p, D),
                             jnp.zeros((D,), jnp.float32)),
        "cls_token": 0.02 * jax.random.normal(keys[1], (1, 1, D), jnp.float32),
        "mask_pos_token": 0.02 * jax.random.normal(keys[2], (1, 1, D), jnp.float32),
        "pos_embed": jnp.asarray(get_2d_sincos_pos_embed(D, grid, cls_token=True))[None],
        "blocks": [init_block(keys[8 + i], D, cfg["num_heads"], cfg["mlp_ratio"])
                   for i in range(cfg["depth"])],
        "norm_g": jnp.ones((1, D), jnp.float32), "norm_b": jnp.zeros((1, D), jnp.float32),
    }
    Dd = cfg["decoder_embed_dim"]
    params["dec_embed"] = make_linear(_init_linear(keys[3], D, Dd),
                                      jnp.zeros((Dd,), jnp.float32))
    params["dec_blocks"] = [init_block(keys[8 + cfg["depth"] + i], Dd,
                                       cfg["decoder_num_heads"], cfg["mlp_ratio"])
                            for i in range(cfg["decoder_depth"])]
    params["dec_norm_g"] = jnp.ones((1, Dd), jnp.float32)
    params["dec_norm_b"] = jnp.zeros((1, Dd), jnp.float32)
    params["dec_pred"] = make_linear(_init_linear(keys[4], Dd, cfg["num_targets"]), None)
    return params


def gather_tokens(x, ids):
    return jax.vmap(lambda xb, ib: xb[ib])(x, ids)


def patch_embed(x, lin, patch_size):
    """Conv(k=stride=patch_size) as a patchified GEMM (fused Pallas matmul)."""
    B, C, H, W = x.shape
    gh, gw = H // patch_size, W // patch_size
    patches = x.reshape(B, C, gh, patch_size, gw, patch_size)
    patches = jnp.transpose(patches, (0, 2, 4, 1, 3, 5))       # B gh gw C ph pw
    patches = patches.reshape(B * gh * gw, C * patch_size * patch_size)
    y = pallas_linear(patches, lin)
    return y.reshape(B, gh * gw, -1)


def random_masking(key, B, N, mask_ratio):
    len_keep = int(N * (1 - mask_ratio))
    noise = jax.random.uniform(key, (B, N))
    ids_shuffle = jnp.argsort(noise, axis=1)
    ids_restore = jnp.argsort(ids_shuffle, axis=1)
    ids_keep = ids_shuffle[:, :len_keep]
    ids_remove = ids_shuffle[:, len_keep:]
    mask = jnp.ones((B, N), jnp.float32).at[:, :len_keep].set(0.0)
    mask = jnp.take_along_axis(mask, ids_restore, axis=1).astype(bool)
    return ids_keep, mask, ids_restore, ids_remove


def sample_and_stitch(key, x, patch_size):
    # TODO(synk): `sample_and_stitch` is an external PART helper; the 'canonical'
    # strategy is reimplemented as a per-sample random permutation of on-grid
    # patches, returning the stitched image and the (y, x) pixel position of the
    # source patch placed at each slot.
    B, C, H, W = x.shape
    gh, gw = H // patch_size, W // patch_size
    N = gh * gw
    patches = x.reshape(B, C, gh, patch_size, gw, patch_size)
    patches = jnp.transpose(patches, (0, 2, 4, 1, 3, 5)).reshape(B, N, C, patch_size, patch_size)
    perm = jax.vmap(lambda k: jax.random.permutation(k, N))(jax.random.split(key, B))
    shuffled = jax.vmap(lambda p, idx: p[idx])(patches, perm)
    img = shuffled.reshape(B, gh, gw, C, patch_size, patch_size)
    img = jnp.transpose(img, (0, 3, 1, 4, 2, 5)).reshape(B, C, H, W)
    grid_y = (jnp.arange(N) // gw) * patch_size
    grid_x = (jnp.arange(N) % gw) * patch_size
    pos = jnp.stack([grid_y, grid_x], axis=-1)                 # (N, 2)
    patch_positions = jax.vmap(lambda idx: pos[idx])(perm)     # (B, N, 2)
    return img, patch_positions


def vit_block(x, p, num_heads):
    """Pre-norm ViT block: 4 fused pallas_calls (LN1+QKV, attn+proj+res, LN2+FC1+GELU, FC2+res)."""
    B, S, D = x.shape
    x2 = x.reshape(B * S, D)
    qkv = pallas_linear(x2, p["qkv"], ln=(p["ln1_g"], p["ln1_b"]),
                        out_dtype=jnp.bfloat16)                       # bf16 intermediate
    x = pallas_attention_proj(qkv.reshape(B, S, 3 * D), p["w_proj"], p["b_proj"],
                              x, num_heads)
    x2 = x.reshape(B * S, D)
    h = pallas_linear(x2, p["fc1"], ln=(p["ln2_g"], p["ln2_b"]), activation="gelu",
                      out_dtype=jnp.bfloat16)                         # bf16 intermediate
    x2 = pallas_linear(h, p["fc2"], residual=x2)
    return x2.reshape(B, S, D)


def forward(params, x, cfg, key):
    img_size = x.shape[-2]
    assert img_size == x.shape[-1], "Input image must be square"
    k_stitch, k_mask, k_pos = jax.random.split(key, 3)
    x_shuffled, patch_positions = sample_and_stitch(k_stitch, x, cfg["patch_size"])

    # ------------------------------ encoder ------------------------------
    tokens = patch_embed(x_shuffled, params["patch"], cfg["patch_size"])
    B, N, D = tokens.shape
    mask_ratio, pos_mask_ratio = cfg["mask_ratio"], cfg["pos_mask_ratio"]

    ids_keep, mask, ids_restore, _ = random_masking(k_mask, B, N, mask_ratio)
    x_vis = gather_tokens(tokens, ids_keep)
    pos_all = jnp.broadcast_to(params["pos_embed"][:, 1:, :], (B, N, D))
    pos_vis = gather_tokens(pos_all, ids_keep)
    N_vis = x_vis.shape[1]

    ids_keep_pos, mask_pos, ids_restore_pos, _ = random_masking(k_pos, B, N_vis, pos_mask_ratio)
    pos_kept = gather_tokens(pos_vis, ids_keep_pos)
    mask_pos_length = math.ceil(math.floor(N * (1 - mask_ratio)) * pos_mask_ratio)
    mask_pos_tokens = jnp.broadcast_to(params["mask_pos_token"], (B, mask_pos_length, D))
    pos_full = jnp.concatenate([pos_kept, mask_pos_tokens], axis=1)
    pos_full = gather_tokens(pos_full, ids_restore_pos)

    x_enc = x_vis + pos_full
    cls = params["cls_token"] + params["pos_embed"][:, :1, :]
    x_enc = jnp.concatenate([jnp.broadcast_to(cls, (B, 1, D)), x_enc], axis=1)
    for p_blk in params["blocks"]:
        x_enc = vit_block(x_enc, p_blk, cfg["num_heads"])
    S = x_enc.shape[1]
    z = pallas_layernorm(x_enc.reshape(B * S, D), params["norm_g"],
                         params["norm_b"]).reshape(B, S, D)

    # ------------------------------ decoder ------------------------------
    Dd = cfg["decoder_embed_dim"]
    xd = pallas_linear(z.reshape(B * S, D), params["dec_embed"]).reshape(B, S, Dd)
    for p_blk in params["dec_blocks"]:
        xd = vit_block(xd, p_blk, cfg["decoder_num_heads"])
    # decoder norm fused into the prediction head GEMM
    xd = pallas_linear(xd.reshape(B * S, Dd), params["dec_pred"],
                       ln=(params["dec_norm_g"], params["dec_norm_b"]))
    xd = xd.reshape(B, S, cfg["num_targets"])[:, 1:, :]        # drop cls -> (B, N_vis, 2)

    # boolean selection x[mask_pos].view(B, -1, C): fixed per-row count, take
    # masked indices in ascending order.
    N_nopos = N_vis - ids_keep_pos.shape[1]
    order_key = jnp.where(mask_pos, 0, 1) * N_vis + jnp.arange(N_vis)[None, :]
    masked_idx = jnp.argsort(order_key, axis=1)[:, :N_nopos]   # (B, N_nopos)
    x_nopos = gather_tokens(xd, masked_idx)                    # (B, N_nopos, 2)
    pred_T = pallas_pairwise_tanh(x_nopos, img_size)           # (B, N_nopos**2, 2)

    ids_nopos = jax.vmap(lambda a, i: a[i])(ids_keep, masked_idx)

    # -------------------------------- loss --------------------------------
    ii = jnp.repeat(ids_nopos, N_nopos, axis=1)                # pair index i at i*Nn+j
    jj = jnp.tile(ids_nopos, (1, N_nopos))                     # pair index j at i*Nn+j
    patch_pair_indices = jnp.stack([ii, jj], axis=-1)
    p1 = jax.vmap(lambda pos, idx: pos[idx])(patch_positions, ii)
    p2 = jax.vmap(lambda pos, idx: pos[idx])(patch_positions, jj)
    gt_T = (p1 - p2).astype(jnp.float32)
    loss = pallas_mse(pred_T, gt_T, img_size)

    return {
        "z": z, "mask": mask, "ids_keep": ids_keep, "ids_restore": ids_restore,
        "mask_pos": mask_pos, "ids_keep_pos": ids_keep_pos,
        "ids_restore_pos": ids_restore_pos, "pred_T": pred_T,
        "ids_nopos": ids_nopos, "x_shuffled": x_shuffled,
        "patch_positions": patch_positions,
        "patch_pair_indices": patch_pair_indices, "gt_T": gt_T, "loss": loss,
    }


if __name__ == "__main__":
    cfg = dict(img_size=32, patch_size=8, in_chans=3, embed_dim=32, depth=2,
               num_heads=4, mlp_ratio=4.0, mask_ratio=0.75, pos_mask_ratio=0.75,
               decoder_embed_dim=16, decoder_depth=1, decoder_num_heads=4,
               num_targets=2)
    key = jax.random.PRNGKey(0)
    k_param, k_data, k_fwd = jax.random.split(key, 3)
    params = init_params(k_param, cfg)
    x = jax.random.normal(k_data, (2, cfg["in_chans"], cfg["img_size"], cfg["img_size"]),
                          jnp.float32)
    out = forward(params, x, cfg, k_fwd)
    jax.block_until_ready(out["pred_T"])
    jax.block_until_ready(out["loss"])
    print("KERNEL_OK")
</pallas_src>

<mosaic_0001>
module attributes {stable_mosaic.version = 11 : i64} {
  func.func @_fused_linear_kernel(%arg0: i32, %arg1: i32, %arg2: i32, %arg3: memref<32x192xf32, #tpu.memory_space<vmem>>, %arg4: memref<192x128xbf16, #tpu.memory_space<vmem>>, %arg5: memref<1x128xf32, #tpu.memory_space<vmem>>, %arg6: memref<32x128xf32, #tpu.memory_space<vmem>>) attributes {dimension_semantics = [#tpu.dimension_semantics<parallel>, #tpu.dimension_semantics<parallel>, #tpu.dimension_semantics<arbitrary>], iteration_bounds = array<i64: 1, 1, 1>, scalar_prefetch = 0 : i64, scratch_operands = 0 : i64, tpu.core_type = #tpu.core_type<tc>, window_params = [{transform_indices = @transform_0, window_bounds = array<i64: 32, 192>}, {transform_indices = @transform_1, window_bounds = array<i64: 192, 128>}, {transform_indices = @transform_2, window_bounds = array<i64: 1, 128>}, {transform_indices = @transform_3, window_bounds = array<i64: 32, 128>}]} {
    %c0 = arith.constant 0 : index
    %c0_0 = arith.constant 0 : index
    %0 = vector.load %arg3[%c0, %c0_0] : memref<32x192xf32, #tpu.memory_space<vmem>>, vector<32x192xf32>
    %1 = arith.truncf %0 : vector<32x192xf32> to vector<32x192xbf16>
    %c0_1 = arith.constant 0 : index
    %c0_2 = arith.constant 0 : index
    %2 = vector.load %arg4[%c0_1, %c0_2] : memref<192x128xbf16, #tpu.memory_space<vmem>>, vector<192x128xbf16>
    %cst = arith.constant dense<0.000000e+00> : vector<32x128xf32>
    %3 = tpu.matmul %1, %2, %cst {dimension_numbers = #tpu.dot_dimension_numbers<[1], [0], [0], [1], [0, 0, 1, 1], [], []>} : vector<32x192xbf16>, vector<192x128xbf16>, vector<32x128xf32> -> vector<32x128xf32>
    %c0_3 = arith.constant 0 : index
    %c0_4 = arith.constant 0 : index
    %4 = vector.load %arg5[%c0_3, %c0_4] : memref<1x128xf32, #tpu.memory_space<vmem>>, vector<1x128xf32>
    %5 = vector.broadcast %4 : vector<1x128xf32> to vector<32x128xf32>
    %6 = arith.addf %3, %5 : vector<32x128xf32>
    %c0_5 = arith.constant 0 : index
    %c0_6 = arith.constant 0 : index
    %7 = vector.load %arg6[%c0_5, %c0_6] : memref<32x128xf32, #tpu.memory_space<vmem>>, vector<32x128xf32>
    tpu.vector_store %arg6[%c0_5, %c0_6], %6 {strides = array<i32>} : memref<32x128xf32, #tpu.memory_space<vmem>>, vector<32x128xf32>,
    return
  }
  func.func @transform_0(%arg0: i32, %arg1: i32, %arg2: i32) -> (i32, i32) {
    %c0_i32 = arith.constant 0 : i32
    return %arg0, %arg2 : i32, i32
  }
  func.func @transform_1(%arg0: i32, %arg1: i32, %arg2: i32) -> (i32, i32) {
    %c0_i32 = arith.constant 0 : i32
    return %arg2, %arg1 : i32, i32
  }
  func.func @transform_2(%arg0: i32, %arg1: i32, %arg2: i32) -> (i32, i32) {
    %c0_i32 = arith.constant 0 : i32
    %c0_i32_0 = arith.constant 0 : i32
    return %c0_i32, %arg1 : i32, i32
  }
  func.func @transform_3(%arg0: i32, %arg1: i32, %arg2: i32) -> (i32, i32) {
    %c0_i32 = arith.constant 0 : i32
    return %arg0, %arg1 : i32, i32
  }
}

</mosaic_0001>

<bundles_post_ra>
// kernel: tpu_custom_call.1
= control target key start
LH: loop header
LB: loop body
LE: loop exit
PB: predicated region body
PF: predicated region fallthrough
CT: control target
= control target key end

     0   :  { %8 = vsyncpa [#allocation3], 0  ;;  %s463_s0 = inlined_call_operand.hbm [shape: f32[32,192], index: 0, kind: input, shape index: {}]   ;;  %s464_s1 = inlined_call_operand.hbm [shape: bf16[192,128], index: 1, kind: input, shape index: {}]   ;;  %s465_s2 = inlined_call_operand.vmem [shape: f32[1,128], index: 2, kind: input, shape index: {}]   ;;  %s466_s3 = inlined_call_operand.hbm [shape: f32[32,128], index: 3, kind: output, shape index: {}]  }
   0x1   :  { %9 = vsyncpa [#allocation6], 0 }
   0x2   :  { %10 = vsyncpa [#allocation4], 0  ;;  %s370_s12 = smov [#allocation2]   ;;  %s298_s16 = scalar_lea.hbm %s463_s0, 1024 }
   0x3   :  { %s16_s13 = sshll.u32 %s370_s12, 4  ;;  %p299_p0 = scmp.ne.s32.totalorder %s463_s0, %s298_s16  ;;  %s17_s13 = int_to_ptr.vmem [resolvable:$true] %s16_s13 }
   0x4   :  { %p302_p1 = scmp.lt.u32.totalorder %s298_s16, %s463_s0 }
   0x6   :  { %p304_p2 = pnand %p302_p1, %p299_p0 }
   0x8   :  { %307 = shalt.err (!%p304_p2)
}
   0x9   :  { %s308_s21 = scalar_lea.vmem %s17_s13, 1024  ;;  %p313_p4 = scmp.lt.s32.totalorder %s17_s13, %s17_s13 }
   0xa   :  { %p309_p3 = scmp.ne.s32.totalorder %s17_s13, %s308_s21  ;;  %p314_p5 = scmp.lt.s32.totalorder %s308_s21, %s308_s21 }
   0xc   :  { %p315_p6 = por %p314_p5, %p313_p4 }
   0xe   :  { %p316_p7 = pnand %p315_p6, %p309_p3 }
  0x10   :  { %319 = shalt.err (!%p316_p7)
}
  0x11   :  { %s371_s22 = smov 256   ;;  %s372_s23 = smov 16  }
  0x12   :  { %22 = dma.hbm_to_vmem [thread:$0]  %s463_s0, 1024, %s17_s13, [#allocation3], %s371_s22, %s371_s22, %s372_s23  }
  0x13   :  { %s373_s26 = smov [#allocation5]   ;;  %s320_s30 = scalar_lea.hbm %s464_s1, 1536 }
  0x14   :  { %s28_s27 = sshll.u32 %s373_s26, 4  ;;  %p321_p8 = scmp.ne.s32.totalorder %s464_s1, %s320_s30  ;;  %s29_s27 = int_to_ptr.vmem [resolvable:$true] %s28_s27 }
  0x15   :  { %p324_p9 = scmp.lt.u32.totalorder %s320_s30, %s464_s1 }
  0x17   :  { %p326_p10 = pnand %p324_p9, %p321_p8 }
  0x19   :  { %329 = shalt.err (!%p326_p10)
}
  0x1a   :  { %s330_s8 = scalar_lea.vmem %s29_s27, 1536  ;;  %p335_p12 = scmp.lt.s32.totalorder %s29_s27, %s29_s27 }
  0x1b   :  { %p331_p11 = scmp.ne.s32.totalorder %s29_s27, %s330_s8  ;;  %p336_p13 = scmp.lt.s32.totalorder %s330_s8, %s330_s8 }
  0x1d   :  { %p337_p0 = por %p336_p13, %p335_p12 }
  0x1f   :  { %p338_p1 = pnand %p337_p0, %p331_p11 }
  0x21   :  { %341 = shalt.err (!%p338_p1)
}
  0x22   :  { %s374_s0 = smov 64   ;;  %s375_s9 = smov 4  }
  0x23   :  { %34 = dma.hbm_to_vmem [thread:$0]  %s464_s1, 1536, %s29_s27, [#allocation6], %s374_s0, %s374_s0, %s375_s9  }
  0x24   :  { %364 = dma.done.wait [#allocation3], 1024  }
  0x25   :  { %365 = vsyncadd [#allocation3], 4294966272 }
  0x26   :  { %366 = dma.done.wait [#allocation6], 1536  }
  0x27   :  { %367 = vsyncadd [#allocation6], 4294965760  ;;  %v376_v0 = vmov 0   ;;  %v286_v1 = vld [vmem:[#allocation5] sm:$0xff]   ;;  %v287_v2 = vld [vmem:[#allocation5 + $0x8] sm:$0xff]   ;;  %vm159_vm0 = vcmask 523264  }
  0x28   :  { %166 = vmatprep.subr.bf16.mxu0 %v376_v0  ;;  %252 = vmatprep.subr.bf16.mxu1 %v376_v0  ;;  %v288_v3 = vld [vmem:[#allocation5 + $0x10] sm:$0xff]   ;;  %v289_v4 = vld [vmem:[#allocation5 + $0x18] sm:$0xff]   ;;  %v45_v5 = vld [vmem:[#allocation2 + $0x8] sm:$0xff]  ;;  %s377_s13 = smov [#allocation7]  }
  0x29   :  { %167 = vmatpush1.bf16.msra.mxu0 %v286_v1  ;;  %264 = vmatpush1.bf16.msra.mxu1 %v286_v1  ;;  %v47_v6 = vld [vmem:[#allocation2 + $0x18] sm:$0xff]  ;;  %v49_v7 = vld [vmem:[#allocation2 + $0x28] sm:$0xff]  ;;  %v290_v10 = vld [vmem:[#allocation5 + $0x20] sm:$0xff]   ;;  %s224_s14 = sshll.u32 %s377_s13, 4  ;;  %s225_s14 = int_to_ptr.vmem [resolvable:$true] %s224_s14 }
  0x2a   :  { %168 = vmatprep.subr.bf16.mxu0 %v376_v0  ;;  %253 = vmatprep.subr.bf16.mxu1 %v376_v0  ;;  %v53_v8 = vpack.c.bf16 %v47_v6, %v45_v5  ;;  %v51_v9 = vld [vmem:[#allocation2 + $0x38] sm:$0xff]  ;;  %v291_v12 = vld [vmem:[#allocation5 + $0x28] sm:$0xff]   ;;  %v292_v13 = vld [vmem:[#allocation5 + $0x30] sm:$0xff]   ;;  %p347_p3 = scmp.lt.s32.totalorder %s225_s14, %s225_s14 }
  0x2b   :  { %v55_v11 = vpack.c.bf16 %v51_v9, %v49_v7  ;;  %v293_v14 = vld [vmem:[#allocation5 + $0x38] sm:$0xff]   ;;  %v294_v15 = vld [vmem:[#allocation5 + $0x40] sm:$0xff]   ;;  %v295_v16 = vld [vmem:[#allocation5 + $0x48] sm:$0xff]  }
  0x2c   :  { %250 = vmatprep.mubr.msk.bf16.mxu0 %vm159_vm0, %v53_v8  ;;  %v296_v17 = vld [vmem:[#allocation5 + $0x50] sm:$0xff]   ;;  %v297_v18 = vld [vmem:[#allocation5 + $0x58] sm:$0xff]   ;;  %v44_v19 = vld [vmem:[#allocation2] sm:$0xff] }
  0x2d   :  { %169 = vmatpush1.bf16.msra.mxu0 %v287_v2  ;;  %265 = vmatpush1.bf16.msra.mxu1 %v287_v2  ;;  %v46_v20 = vld [vmem:[#allocation2 + $0x10] sm:$0xff]  ;;  %v48_v21 = vld [vmem:[#allocation2 + $0x20] sm:$0xff] }
  0x2e   :  { %170 = vmatprep.subr.bf16.mxu0 %v376_v0  ;;  %254 = vmatprep.subr.bf16.mxu1 %v376_v0  ;;  %v50_v22 = vld [vmem:[#allocation2 + $0x30] sm:$0xff]  ;;  %v52_v23 = vpack.c.bf16 %v46_v20, %v44_v19  ;;  %v237_v25 = vld [vmem:[%s465_s2] ss:$0 sm:$0xff]  ;;  %s342_s2 = scalar_lea.vmem %s225_s14, 512 }
  0x2f   :  { %251 = vmatprep.mubr.msk.bf16.mxu1 %vm159_vm0, %v55_v11  ;;  %v54_v24 = vpack.c.bf16 %v50_v22, %v48_v21  ;;  %p343_p2 = scmp.ne.s32.totalorder %s225_s14, %s342_s2  ;;  %p348_p4 = scmp.lt.s32.totalorder %s342_s2, %s342_s2 }
  0x31   :  { %171 = vmatpush1.bf16.msra.mxu0 %v288_v3  ;;  %266 = vmatpush1.bf16.msra.mxu1 %v288_v3  ;;  %p349_p5 = por %p348_p4, %p347_p3 }
  0x32   :  { %172 = vmatprep.subr.bf16.mxu0 %v376_v0  ;;  %255 = vmatprep.subr.bf16.mxu1 %v376_v0 }
  0x33   :  { %p350_p6 = pnand %p349_p5, %p343_p2 }
  0x35   :  { %173 = vmatpush1.bf16.msra.mxu0 %v289_v4  ;;  %267 = vmatpush1.bf16.msra.mxu1 %v289_v4 }
  0x36   :  { %174 = vmatprep.subr.bf16.mxu0 %v376_v0  ;;  %256 = vmatprep.subr.bf16.mxu1 %v376_v0 }
  0x39   :  { %175 = vmatpush1.bf16.msra.mxu0 %v290_v10  ;;  %268 = vmatpush1.bf16.msra.mxu1 %v290_v10 }
  0x3a   :  { %176 = vmatprep.subr.bf16.mxu0 %v376_v0  ;;  %257 = vmatprep.subr.bf16.mxu1 %v376_v0 }
  0x3d   :  { %177 = vmatpush1.bf16.msra.mxu0 %v291_v12  ;;  %269 = vmatpush1.bf16.msra.mxu1 %v291_v12 }
  0x3e   :  { %178 = vmatprep.subr.bf16.mxu0 %v376_v0  ;;  %258 = vmatprep.subr.bf16.mxu1 %v376_v0 }
  0x41   :  { %179 = vmatpush1.bf16.msra.mxu0 %v292_v13  ;;  %270 = vmatpush1.bf16.msra.mxu1 %v292_v13 }
  0x42   :  { %180 = vmatprep.subr.bf16.mxu0 %v376_v0  ;;  %259 = vmatprep.subr.bf16.mxu1 %v376_v0 }
  0x45   :  { %181 = vmatpush1.bf16.msra.mxu0 %v293_v14  ;;  %271 = vmatpush1.bf16.msra.mxu1 %v293_v14 }
  0x46   :  { %182 = vmatprep.subr.bf16.mxu0 %v376_v0  ;;  %260 = vmatprep.subr.bf16.mxu1 %v376_v0 }
  0x49   :  { %183 = vmatpush1.bf16.msra.mxu0 %v294_v15  ;;  %272 = vmatpush1.bf16.msra.mxu1 %v294_v15 }
  0x4a   :  { %184 = vmatprep.subr.bf16.mxu0 %v376_v0  ;;  %261 = vmatprep.subr.bf16.mxu1 %v376_v0 }
  0x4d   :  { %185 = vmatpush1.bf16.msra.mxu0 %v295_v16  ;;  %273 = vmatpush1.bf16.msra.mxu1 %v295_v16 }
  0x4e   :  { %186 = vmatprep.subr.bf16.mxu0 %v376_v0  ;;  %262 = vmatprep.subr.bf16.mxu1 %v376_v0 }
  0x51   :  { %187 = vmatpush1.bf16.msra.mxu0 %v296_v17  ;;  %274 = vmatpush1.bf16.msra.mxu1 %v296_v17 }
  0x52   :  { %188 = vmatprep.subr.bf16.mxu0 %v376_v0  ;;  %263 = vmatprep.subr.bf16.mxu1 %v376_v0 }
  0x55   :  { %189 = vmatpush1.bf16.msra.mxu0 %v297_v18  ;;  %275 = vmatpush1.bf16.msra.mxu1 %v297_v18 }
  0x58   :  { %199 = vmatmul.mubr.bf16.vlgmr.msra.gmra.mrb[0].mxu0 %v52_v23  ;;  %207 = vmatmul.mubr.bf16.vlgmr.msra.gmra.mrb[0].mxu1 %v54_v24 }
 0x12b   :  { %v200_v26 = vpop.f32.mrb[0].mxu0  ;;  %v208_v27 = vpop.f32.mrb[0].mxu1 }
 0x12c   :  { %v201_v28 = vadd.f32 %v237_v25, %v200_v26  ;;  %v209_v29 = vadd.f32 %v237_v25, %v208_v27  ;;  %v202_v30 = vpop.f32.mrb[1].mxu0  ;;  %v210_v31 = vpop.f32.mrb[1].mxu1 }
 0x12d   :  { %v203_v32 = vpop.f32.mrb[2].mxu0  ;;  %v211_v33 = vpop.f32.mrb[2].mxu1 }
 0x12e   :  { %215 = vst [vmem:[#allocation7] sm:$0xff] %v201_v28  ;;  %217 = vst [vmem:[#allocation7 + $0x10] sm:$0xff] %v209_v29  ;;  %v204_v34 = vadd.f32 %v237_v25, %v203_v32  ;;  %v212_v35 = vadd.f32 %v237_v25, %v211_v33  ;;  %v205_v36 = vpop.f32.mrb[3].mxu0  ;;  %v213_v37 = vpop.f32.mrb[3].mxu1 }
 0x130   :  { %216 = vst [vmem:[#allocation7 + $0x8] sm:$0xff] %v204_v34  ;;  %218 = vst [vmem:[#allocation7 + $0x18] sm:$0xff] %v212_v35 }
 0x131   :  { %353 = shalt.err (!%p350_p6)
}
 0x132   :  { %s354_s17 = scalar_lea.hbm %s466_s3, 512 }
 0x133   :  { %p355_p7 = scmp.ne.s32.totalorder %s466_s3, %s354_s17  ;;  %p358_p8 = scmp.lt.u32.totalorder %s354_s17, %s466_s3 }
 0x135   :  { %p360_p9 = pnand %p358_p8, %p355_p7 }
 0x137   :  { %363 = shalt.err (!%p360_p9)
}
 0x138   :  { %s378_s22 = smov 128   ;;  %s379_s23 = smov 8  }
 0x139   :  { %230 = dma.vmem_to_hbm [thread:$0]  %s225_s14, 512, %s466_s3, [#allocation4], %s378_s22, %s378_s22, %s379_s23  }
 0x13a   :  { %368 = dma.done.wait [#allocation4], 512  }
 0x13b   :  { %369 = vsyncadd [#allocation4], 4294966784 }
 0x13c   :  { %234 = vsyncpa [#allocation3], 1 }
 0x13d   :  { %235 = vsyncpa [#allocation6], 1 }
 0x13e   :  { %236 = vsyncpa [#allocation4], 1 }

</bundles_post_ra>
